<compile_context>
chip_gen: v7x
topology: tpu7x:2x2x1
jax: 0.10.0
libtpu: 0.0.40
codegen_flags: <defaults>
</compile_context>

<pallas_src>
import functools

import jax
import jax.numpy as jnp
from jax.experimental import pallas as pl
from jax.experimental.pallas import tpu as pltpu


def _label_smoothing_kernel(pred_ref, target_ref, *rest,
                            smoothing, confidence, num_classes, n_valid,
                            has_weight):
    if has_weight:
        weight_ref, loss_ref, wsum_ref = rest
    else:
        loss_ref, wsum_ref = rest

    pred = pred_ref[...].astype(jnp.float32)          # (T, C), f32 math
    tgt = target_ref[...]                             # (T, 1) int32
    t, c = pred.shape

    # log_softmax pieces along the class (lane) axis.
    m = jnp.max(pred, axis=-1, keepdims=True)
    shifted = pred - m
    lse = jnp.log(jnp.sum(jnp.exp(shifted), axis=-1, keepdims=True))   # (T, 1)

    # sum_c logp = sum_c shifted - C * lse   (no true_dist materialization)
    sum_logp = jnp.sum(shifted, axis=-1, keepdims=True) - c * lse      # (T, 1)

    col = jax.lax.broadcasted_iota(jnp.int32, (t, c), 1)
    is_target = col == tgt                                             # (T, C)
    logp_t = jnp.sum(jnp.where(is_target, shifted, 0.0),
                     axis=-1, keepdims=True) - lse                     # (T, 1)

    smooth_val = smoothing / (num_classes - 1)
    per_row = -(smooth_val * sum_logp + (confidence - smooth_val) * logp_t)

    if has_weight:
        w = weight_ref[...].astype(jnp.float32)                        # (1, C)
        w_t = jnp.sum(jnp.where(is_target, jnp.broadcast_to(w, (t, c)), 0.0),
                      axis=-1, keepdims=True)                          # (T, 1)
    else:
        w_t = jnp.ones((t, 1), dtype=jnp.float32)

    # Mask rows that are padding (when N is not a multiple of the row tile).
    row = pl.program_id(0) * t + jax.lax.broadcasted_iota(jnp.int32, (t, 1), 0)
    valid = row < n_valid
    loss_ref[...] = jnp.where(valid, per_row * w_t, 0.0)
    wsum_ref[...] = jnp.where(valid, w_t, 0.0)


def _pick_row_tile(n, c, in_itemsize):
    # Keep the per-step working set (double-buffered native-dtype input block
    # plus ~6 f32-sized (T, C) intermediates) well inside v7x's 64 MiB VMEM
    # (32 MiB scoped default); on v5e/v6e this is even more comfortable.
    budget = 12 * 1024 * 1024
    per_row = c * (2 * in_itemsize + 6 * 4)
    t = min(budget // max(per_row, 1), 512, n)
    return max(8, (int(t) // 8) * 8)


def label_smoothing_loss(pred, target, weight=None, smoothing=0.0):
    """pred: (N, C) float (bf16 or f32), target: (N,) int in [0, C-1].

    Returns the scalar f32 label-smoothed, class-weighted cross entropy:
        mean(weighted_loss) * N / sum(weight[target])
    """
    n, c = pred.shape
    confidence = 1.0 - smoothing
    has_weight = weight is not None

    in_itemsize = jnp.dtype(pred.dtype).itemsize
    tile = _pick_row_tile(n, c, in_itemsize)
    n_tiles = pl.cdiv(n, tile)
    n_pad = n_tiles * tile

    target_2d = target.astype(jnp.int32).reshape(n, 1)
    if n_pad != n:
        pred = jnp.pad(pred, ((0, n_pad - n), (0, 0)))
        target_2d = jnp.pad(target_2d, ((0, n_pad - n), (0, 0)))

    kernel = functools.partial(
        _label_smoothing_kernel,
        smoothing=float(smoothing), confidence=float(confidence),
        num_classes=int(c), n_valid=int(n), has_weight=has_weight)

    in_specs = [
        pl.BlockSpec((tile, c), lambda i: (i, 0)),     # pred, native dtype
        pl.BlockSpec((tile, 1), lambda i: (i, 0)),     # target column (int32)
    ]
    args = [pred, target_2d]
    if has_weight:
        in_specs.append(pl.BlockSpec((1, c), lambda i: (0, 0)))
        args.append(weight.astype(jnp.float32).reshape(1, c))

    cost = pl.CostEstimate(
        flops=6 * n * c,
        transcendentals=n * c,
        bytes_accessed=(n * c * in_itemsize + n * 4
                        + (c * 4 if has_weight else 0) + 2 * n_pad * 4),
    )

    loss_rows, w_rows = pl.pallas_call(
        kernel,
        out_shape=(jax.ShapeDtypeStruct((n_pad, 1), jnp.float32),
                   jax.ShapeDtypeStruct((n_pad, 1), jnp.float32)),
        grid=(n_tiles,),
        in_specs=in_specs,
        out_specs=(pl.BlockSpec((tile, 1), lambda i: (i, 0)),
                   pl.BlockSpec((tile, 1), lambda i: (i, 0))),
        compiler_params=pltpu.CompilerParams(
            dimension_semantics=("parallel",),
            vmem_limit_bytes=48 * 1024 * 1024),
        cost_estimate=cost,
    )(*args)

    # mean(weighted) * N / sum(weight[target]) == sum(weighted) / sum(w[target])
    return (jnp.sum(loss_rows) / jnp.sum(w_rows)).astype(jnp.float32)


def _reference(pred, target, weight, smoothing):
    confidence = 1.0 - smoothing
    n, c = pred.shape
    logp = jax.nn.log_softmax(pred.astype(jnp.float32), axis=-1)
    true_dist = jnp.full((n, c), smoothing / (c - 1), dtype=jnp.float32)
    true_dist = true_dist.at[jnp.arange(n), target].set(confidence)
    if weight is None:
        weight = jnp.ones((c,), dtype=jnp.float32)
    w_t = weight.astype(jnp.float32)[target]
    weighted = jnp.sum(-true_dist * logp, axis=-1) * w_t
    return jnp.mean(weighted) * w_t.size / jnp.sum(w_t)


if __name__ == "__main__":
    N, C = 16, 256
    smoothing = 0.1

    key = jax.random.PRNGKey(0)
    k_pred, k_tgt, k_w = jax.random.split(key, 3)
    pred = jax.random.normal(k_pred, (N, C), dtype=jnp.float32).astype(jnp.bfloat16)
    target = jax.random.randint(k_tgt, (N,), 0, C, dtype=jnp.int32)
    weight = jax.random.uniform(k_w, (C,), jnp.float32, 0.5, 1.5)

    # Weighted path.
    loss_w = label_smoothing_loss(pred, target, weight=weight, smoothing=smoothing)
    loss_w = jax.block_until_ready(loss_w)
    ref_w = _reference(pred, target, weight, smoothing)
    assert jnp.allclose(loss_w, ref_w, rtol=1e-4, atol=1e-4), (loss_w, ref_w)

    # Default (weight=None) fast path.
    loss_u = label_smoothing_loss(pred, target, weight=None, smoothing=smoothing)
    loss_u = jax.block_until_ready(loss_u)
    ref_u = _reference(pred, target, None, smoothing)
    assert jnp.allclose(loss_u, ref_u, rtol=1e-4, atol=1e-4), (loss_u, ref_u)

    print("KERNEL_OK")
</pallas_src>

<mosaic_0001>
module attributes {stable_mosaic.version = 11 : i64} {
  func.func @_label_smoothing_kernel(%arg0: i32, %arg1: memref<16x256xbf16, #tpu.memory_space<vmem>>, %arg2: memref<16x1xi32, #tpu.memory_space<vmem>>, %arg3: memref<1x256xf32, #tpu.memory_space<vmem>>, %arg4: memref<16x1xf32, #tpu.memory_space<vmem>>, %arg5: memref<16x1xf32, #tpu.memory_space<vmem>>) attributes {dimension_semantics = [#tpu.dimension_semantics<parallel>], iteration_bounds = array<i64: 1>, scalar_prefetch = 0 : i64, scratch_operands = 0 : i64, tpu.core_type = #tpu.core_type<tc>, window_params = [{transform_indices = @transform_0, window_bounds = array<i64: 16, 256>}, {transform_indices = @transform_1, window_bounds = array<i64: 16, 1>}, {pipeline_mode = #tpu.pipeline_mode<synchronous>, transform_indices = @transform_2, window_bounds = array<i64: 1, 256>}, {transform_indices = @transform_3, window_bounds = array<i64: 16, 1>}, {transform_indices = @transform_4, window_bounds = array<i64: 16, 1>}]} {
    %c0 = arith.constant 0 : index
    %c0_0 = arith.constant 0 : index
    %0 = vector.load %arg1[%c0, %c0_0] : memref<16x256xbf16, #tpu.memory_space<vmem>>, vector<16x256xbf16>
    %1 = arith.extf %0 : vector<16x256xbf16> to vector<16x256xf32>
    %c0_1 = arith.constant 0 : index
    %c0_2 = arith.constant 0 : index
    %2 = vector.load %arg2[%c0_1, %c0_2] : memref<16x1xi32, #tpu.memory_space<vmem>>, vector<16x1xi32>
    %cst = arith.constant dense<0xFF800000> : vector<16xf32>
    %3 = vector.multi_reduction <maximumf>, %1, %cst [1] : vector<16x256xf32> to vector<16xf32>
    %4 = vector.shape_cast %3 : vector<16xf32> to vector<16x1xf32>
    %5 = vector.broadcast %4 : vector<16x1xf32> to vector<16x256xf32>
    %6 = arith.subf %1, %5 : vector<16x256xf32>
    %7 = math.exp %6 : vector<16x256xf32>
    %cst_3 = arith.constant dense<0.000000e+00> : vector<16xf32>
    %8 = vector.multi_reduction <add>, %7, %cst_3 [1] : vector<16x256xf32> to vector<16xf32>
    %9 = vector.shape_cast %8 : vector<16xf32> to vector<16x1xf32>
    %10 = math.log %9 : vector<16x1xf32>
    %cst_4 = arith.constant dense<0.000000e+00> : vector<16xf32>
    %11 = vector.multi_reduction <add>, %6, %cst_4 [1] : vector<16x256xf32> to vector<16xf32>
    %12 = vector.shape_cast %11 : vector<16xf32> to vector<16x1xf32>
    %cst_5 = arith.constant 2.560000e+02 : f32
    %13 = vector.broadcast %cst_5 : f32 to vector<16x1xf32>
    %14 = arith.mulf %13, %10 : vector<16x1xf32>
    %15 = arith.subf %12, %14 : vector<16x1xf32>
    %16 = tpu.iota {dimensions = array<i32: 1>} : vector<16x256xi32>
    %17 = vector.broadcast %2 : vector<16x1xi32> to vector<16x256xi32>
    %18 = arith.cmpi eq, %16, %17 : vector<16x256xi32>
    %cst_6 = arith.constant 0.000000e+00 : f32
    %19 = vector.broadcast %cst_6 : f32 to vector<16x256xf32>
    %20 = arith.select %18, %6, %19 : vector<16x256xi1>, vector<16x256xf32>
    %cst_7 = arith.constant dense<0.000000e+00> : vector<16xf32>
    %21 = vector.multi_reduction <add>, %20, %cst_7 [1] : vector<16x256xf32> to vector<16xf32>
    %22 = vector.shape_cast %21 : vector<16xf32> to vector<16x1xf32>
    %23 = arith.subf %22, %10 : vector<16x1xf32>
    %cst_8 = arith.constant 3.92156857E-4 : f32
    %24 = vector.broadcast %cst_8 : f32 to vector<16x1xf32>
    %25 = arith.mulf %24, %15 : vector<16x1xf32>
    %cst_9 = arith.constant 0.899607837 : f32
    %26 = vector.broadcast %cst_9 : f32 to vector<16x1xf32>
    %27 = arith.mulf %26, %23 : vector<16x1xf32>
    %28 = arith.addf %25, %27 : vector<16x1xf32>
    %cst_10 = arith.constant 0.000000e+00 : f32
    %29 = vector.broadcast %cst_10 : f32 to vector<16x1xf32>
    %30 = arith.subf %29, %28 : vector<16x1xf32>
    %c0_11 = arith.constant 0 : index
    %c0_12 = arith.constant 0 : index
    %31 = vector.load %arg3[%c0_11, %c0_12] : memref<1x256xf32, #tpu.memory_space<vmem>>, vector<1x256xf32>
    %32 = vector.shape_cast %31 : vector<1x256xf32> to vector<1x256xf32>
    %33 = vector.broadcast %32 : vector<1x256xf32> to vector<16x256xf32>
    %cst_13 = arith.constant 0.000000e+00 : f32
    %34 = vector.broadcast %cst_13 : f32 to vector<16x256xf32>
    %35 = arith.select %18, %33, %34 : vector<16x256xi1>, vector<16x256xf32>
    %cst_14 = arith.constant dense<0.000000e+00> : vector<16xf32>
    %36 = vector.multi_reduction <add>, %35, %cst_14 [1] : vector<16x256xf32> to vector<16xf32>
    %37 = vector.shape_cast %36 : vector<16xf32> to vector<16x1xf32>
    %c16_i32 = arith.constant 16 : i32
    %38 = arith.muli %arg0, %c16_i32 : i32
    %39 = tpu.iota {dimensions = array<i32: 0>} : vector<16x1xi32>
    %40 = vector.broadcast %38 : i32 to vector<16x1xi32>
    %41 = arith.addi %40, %39 : vector<16x1xi32>
    %c16_i32_15 = arith.constant 16 : i32
    %42 = vector.broadcast %c16_i32_15 : i32 to vector<16x1xi32>
    %43 = arith.cmpi slt, %41, %42 : vector<16x1xi32>
    %44 = arith.mulf %30, %37 : vector<16x1xf32>
    %cst_16 = arith.constant 0.000000e+00 : f32
    %45 = vector.broadcast %cst_16 : f32 to vector<16x1xf32>
    %46 = arith.select %43, %44, %45 : vector<16x1xi1>, vector<16x1xf32>
    %c0_17 = arith.constant 0 : index
    %c0_18 = arith.constant 0 : index
    %47 = vector.load %arg4[%c0_17, %c0_18] : memref<16x1xf32, #tpu.memory_space<vmem>>, vector<16x1xf32>
    tpu.vector_store %arg4[%c0_17, %c0_18], %46 {strides = array<i32>} : memref<16x1xf32, #tpu.memory_space<vmem>>, vector<16x1xf32>,
    %cst_19 = arith.constant 0.000000e+00 : f32
    %48 = vector.broadcast %cst_19 : f32 to vector<16x1xf32>
    %49 = arith.select %43, %37, %48 : vector<16x1xi1>, vector<16x1xf32>
    %c0_20 = arith.constant 0 : index
    %c0_21 = arith.constant 0 : index
    %50 = vector.load %arg5[%c0_20, %c0_21] : memref<16x1xf32, #tpu.memory_space<vmem>>, vector<16x1xf32>
    tpu.vector_store %arg5[%c0_20, %c0_21], %49 {strides = array<i32>} : memref<16x1xf32, #tpu.memory_space<vmem>>, vector<16x1xf32>,
    return
  }
  func.func @transform_0(%arg0: i32) -> (i32, i32) {
    %c0_i32 = arith.constant 0 : i32
    %c0_i32_0 = arith.constant 0 : i32
    return %arg0, %c0_i32 : i32, i32
  }
  func.func @transform_1(%arg0: i32) -> (i32, i32) {
    %c0_i32 = arith.constant 0 : i32
    %c0_i32_0 = arith.constant 0 : i32
    return %arg0, %c0_i32 : i32, i32
  }
  func.func @transform_2(%arg0: i32) -> (i32, i32) {
    %c0_i32 = arith.constant 0 : i32
    %c0_i32_0 = arith.constant 0 : i32
    %c0_i32_1 = arith.constant 0 : i32
    return %c0_i32, %c0_i32_0 : i32, i32
  }
  func.func @transform_3(%arg0: i32) -> (i32, i32) {
    %c0_i32 = arith.constant 0 : i32
    %c0_i32_0 = arith.constant 0 : i32
    return %arg0, %c0_i32 : i32, i32
  }
  func.func @transform_4(%arg0: i32) -> (i32, i32) {
    %c0_i32 = arith.constant 0 : i32
    %c0_i32_0 = arith.constant 0 : i32
    return %arg0, %c0_i32 : i32, i32
  }
}

</mosaic_0001>

<bundles_post_ra>
// kernel: tpu_custom_call.1
= control target key start
LH: loop header
LB: loop body
LE: loop exit
PB: predicated region body
PF: predicated region fallthrough
CT: control target
= control target key end

     0   :  { %v160_v2 = vmov 0   ;;  %v62_v21 = vlaneseq  ;;  %vm130_vm4 = vcmask 7168   ;;  %s221_s0 = inlined_call_operand.vmem [shape: bf16[16,256], index: 0, kind: input, shape index: {}]   ;;  %s222_s1 = inlined_call_operand.vmem [shape: s32[16,1], index: 1, kind: input, shape index: {}]   ;;  %s223_s2 = inlined_call_operand.vmem [shape: f32[1,256], index: 2, kind: input, shape index: {}]   ;;  %s224_s4 = inlined_call_operand.vmem [shape: f32[16,1], index: 4, kind: output, shape index: {1}]   ;;  %s225_s3 = inlined_call_operand.vmem [shape: f32[16,1], index: 3, kind: output, shape index: {0}]  }
   0x1   :  { %v16_v0 = vld [vmem:[%s221_s0] sm:$0xff]  ;;  %v17_v1 = vld [vmem:[%s221_s0 + $0x8] sm:$0xff]  ;;  %146 = vset.pattern.permute.xlu1 %v160_v2  ;;  %147 = vset.pattern.permute.xlu0 %v160_v2 }
   0x2   :  { %v22_v3 = vld [vmem:[%s222_s1] sm:$0xff]  ;;  %v18_v4 = vunpack.c.l.bf16 %v16_v0  ;;  %v19_v5 = vunpack.c.h.bf16 %v16_v0  ;;  %v20_v6 = vunpack.c.l.bf16 %v17_v1  ;;  %v21_v7 = vunpack.c.h.bf16 %v17_v1  ;;  %v23_v8 = vld [vmem:[%s222_s1 + $0x8] sm:$0xff] }
   0x3   :  { %66 = vperm.xlu1 %146, %v22_v3   ;;  %v63_v23 = vand.u32 127, %v62_v21  ;;  %v98_v32 = vshrl.u32 %v62_v21, 7  ;;  %v95_v39 = vld [vmem:[%s223_s2] sm:$0x3] }
   0x4   :  { %v24_v9 = vmax.f32 %v18_v4, %v19_v5  ;;  %v27_v10 = vmax.f32 %v20_v6, %v21_v7 }
   0x5   :  { %v64_v28 = vadd.s32 128, %v63_v23  ;;  %v99_v37 = vsub.s32 0, %v98_v32  ;;  %v103_v38 = vsub.s32 1, %v98_v32 }
   0x6   :  { %25 = vmax.xlane.f32.xlu0 %v24_v9 }
   0x7   :  { %69 = vperm.xlu1 %146, %v23_v8   ;;  %v100_v43 = vrot.slane %v95_v39, %v99_v37  ;;  %v104_v44 = vrot.slane %v95_v39, %v103_v38 }
   0xa   :  { %28 = vmax.xlane.f32.xlu0 %v27_v10 }
  0x82   :  { %v67_v26 = vpop.permute.xlu1 %66 }
  0x83   :  { %vm71_vm0 = vcmp.eq.s32.totalorder %v63_v23, %v67_v26  ;;  %vm72_vm1 = vcmp.eq.s32.totalorder %v64_v28, %v67_v26 }
  0x84   :  { %v107_v46 = vsel %vm71_vm0, %v100_v43, 0.0  ;;  %v108_v47 = vsel %vm72_vm1, %v104_v44, 0.0 }
  0x85   :  { %v111_v48 = vadd.f32 %v108_v47, %v107_v46 }
  0x86   :  { %v70_v33 = vpop.permute.xlu1 %69 }
  0x87   :  { %vm73_vm2 = vcmp.eq.s32.totalorder %v63_v23, %v70_v33  ;;  %vm74_vm3 = vcmp.eq.s32.totalorder %v64_v28, %v70_v33 }
  0x88   :  { %v109_v49 = vsel %vm73_vm2, %v100_v43, 0.0  ;;  %v110_v50 = vsel %vm74_vm3, %v104_v44, 0.0 }
  0x89   :  { %v114_v51 = vadd.f32 %v110_v50, %v109_v49 }
  0x93   :  { %v26_v11 = vpop.xlane.xlu0 %25 }
  0x94   :  { %v30_v12 = vsub.f32 %v18_v4, %v26_v11  ;;  %v31_v13 = vsub.f32 %v19_v5, %v26_v11 }
  0x96   :  { %v34_v14 = vmul.f32 1.442695, %v30_v12  ;;  %v36_v15 = vmul.f32 1.442695, %v31_v13  ;;  %v52_v30 = vadd.f32 %v31_v13, %v30_v12  ;;  %v75_v35 = vsel %vm71_vm0, %v30_v12, 0.0 }
  0x97   :  { %v29_v16 = vpop.xlane.xlu0 %28  ;;  %v76_v36 = vsel %vm72_vm1, %v31_v13, 0.0 }
  0x98   :  { %148 = vpow2.f32 %v34_v14  ;;  %v32_v17 = vsub.f32 %v20_v6, %v29_v16  ;;  %v33_v18 = vsub.f32 %v21_v7, %v29_v16  ;;  %v79_v40 = vadd.f32 %v76_v36, %v75_v35 }
  0x99   :  { %150 = vpow2.f32 %v36_v15 }
  0x9a   :  { %v38_v19 = vmul.f32 1.442695, %v32_v17  ;;  %v40_v20 = vmul.f32 1.442695, %v33_v18  ;;  %v55_v34 = vadd.f32 %v33_v18, %v32_v17  ;;  %v77_v41 = vsel %vm73_vm2, %v32_v17, 0.0 }
  0x9b   :  { %v78_v42 = vsel %vm74_vm3, %v33_v18, 0.0 }
  0x9c   :  { %152 = vpow2.f32 %v38_v19  ;;  %v82_v45 = vadd.f32 %v78_v42, %v77_v41 }
  0x9d   :  { %154 = vpow2.f32 %v40_v20 }
  0xa2   :  { %v149_v22 = vpop.eup %148 }
  0xa3   :  { %v151_v24 = vpop.eup %150 }
  0xa4   :  { %v42_v25 = vadd.f32 %v151_v24, %v149_v22 }
  0xa6   :  { %v153_v27 = vpop.eup %152  ;;  %43 = vadd.xlane.f32.xlu0 %v42_v25 }
  0xa7   :  { %v155_v29 = vpop.eup %154 }
  0xa8   :  { %v45_v31 = vadd.f32 %v155_v29, %v153_v27 }
  0xaa   :  { %53 = vadd.xlane.f32.xlu0 %v52_v30  ;;  %46 = vadd.xlane.f32.xlu1 %v45_v31 }
  0xae   :  { %56 = vadd.xlane.f32.xlu0 %v55_v34 }
  0xb2   :  { %80 = vadd.xlane.f32.xlu0 %v79_v40 }
  0xb6   :  { %83 = vadd.xlane.f32.xlu0 %v82_v45 }
  0xba   :  { %112 = vadd.xlane.f32.xlu0 %v111_v48 }
  0xbe   :  { %115 = vadd.xlane.f32.xlu0 %v114_v51 }
 0x133   :  { %v44_v52 = vpop.xlane.xlu0 %43 }
 0x134   :  { %156 = vlog2.f32 %v44_v52 }
 0x137   :  { %v47_v53 = vpop.xlane.xlu1 %46  ;;  %v54_v54 = vpop.xlane.xlu0 %53 }
 0x138   :  { %158 = vlog2.f32 %v47_v53 }
 0x13b   :  { %v57_v55 = vpop.xlane.xlu0 %56 }
 0x13e   :  { %v157_v56 = vpop.eup %156 }
 0x13f   :  { %v49_v57 = vmul.f32 0.6931472, %v157_v56  ;;  %v81_v58 = vpop.xlane.xlu0 %80 }
 0x141   :  { %v58_v59 = vmul.f32 256.0, %v49_v57  ;;  %v85_v60 = vsub.f32 %v81_v58, %v49_v57 }
 0x142   :  { %v159_v61 = vpop.eup %158 }
 0x143   :  { %v51_v62 = vmul.f32 0.6931472, %v159_v61  ;;  %v60_v63 = vsub.f32 %v54_v54, %v58_v59  ;;  %v84_v0 = vpop.xlane.xlu0 %83  ;;  %v89_v3 = vmul.f32 0.89960784, %v85_v60 }
 0x145   :  { %v87_v1 = vmul.f32 0.00039215686, %v60_v63  ;;  %v59_v2 = vmul.f32 256.0, %v51_v62  ;;  %v86_v4 = vsub.f32 %v84_v0, %v51_v62 }
 0x147   :  { %v61_v5 = vsub.f32 %v57_v55, %v59_v2  ;;  %v91_v6 = vadd.f32 %v89_v3, %v87_v1  ;;  %v113_v7 = vpop.xlane.xlu0 %112  ;;  %v90_v10 = vmul.f32 0.89960784, %v86_v4 }
 0x148   :  { %135 = vst.msk [vmem:[%s224_s4] sm:$0xff] %vm130_vm4, %v113_v7 }
 0x149   :  { %v88_v8 = vmul.f32 0.00039215686, %v61_v5  ;;  %v93_v9 = vsub.f32 0.0, %v91_v6 }
 0x14b   :  { %v126_v11 = vmul.f32 %v113_v7, %v93_v9  ;;  %v92_v12 = vadd.f32 %v90_v10, %v88_v8  ;;  %v116_v13 = vpop.xlane.xlu0 %115 }
 0x14c   :  { %136 = vst.msk [vmem:[%s224_s4 + $0x8] sm:$0xff] %vm130_vm4, %v116_v13 }
 0x14d   :  { %131 = vst.msk [vmem:[%s225_s3] sm:$0xff] %vm130_vm4, %v126_v11  ;;  %v94_v14 = vsub.f32 0.0, %v92_v12 }
 0x14f   :  { %v127_v15 = vmul.f32 %v116_v13, %v94_v14 }
 0x151   :  { %132 = vst.msk [vmem:[%s225_s3 + $0x8] sm:$0xff] %vm130_vm4, %v127_v15 }

</bundles_post_ra>
